<compile_context>
chip_gen: v7x
topology: tpu7x:2x2x1
jax: 0.10.0
libtpu: 0.0.40
codegen_flags: <defaults>
</compile_context>

<pallas_src>
import functools
import math

import jax
import jax.numpy as jnp
from jax import lax
from jax.experimental import pallas as pl
from jax.experimental.pallas import tpu as pltpu


def _cdiv(a, b):
    return -(-a // b)


def _round_up(x, m):
    return _cdiv(x, m) * m


def _vmem_capacity_bytes():
    try:
        return int(pltpu.get_tpu_info().vmem_capacity_bytes)
    except Exception:
        return 64 << 20  # conservative fallback (v7x per-core VMEM)


def _vonmises_kernel(x_ref, w_ref, z_ref, o_ref, sin_sc, cos_sc):
    """o = sin(x) @ w.T + cos(x) @ z.T for one (batch-tile, out-feature-tile)."""
    # Refresh the sin/cos cache once per batch tile (first out-feature step).
    @pl.when(pl.program_id(1) == 0)
    def _():
        xf = x_ref[...].astype(jnp.float32)  # f32 transcendentals even for bf16 x
        sin_sc[...] = jnp.sin(xf).astype(sin_sc.dtype)
        cos_sc[...] = jnp.cos(xf).astype(cos_sc.dtype)

    # Contract the shared last dim: (tm, K) x (tn, K) -> (tm, tn).
    dims = (((1,), (1,)), ((), ()))
    acc = lax.dot_general(sin_sc[...], w_ref[...], dims,
                          preferred_element_type=jnp.float32)
    acc = acc + lax.dot_general(cos_sc[...], z_ref[...], dims,
                                preferred_element_type=jnp.float32)
    o_ref[...] = acc.astype(o_ref.dtype)


@functools.partial(jax.jit, static_argnames=("tm",))
def vonmises_layer(x, w, z, *, tm=256):
    """VonMisesLayer forward.

    x: (B, size_in)
    w, z: (size_out, size_in)   -- PyTorch nn.Linear weight layout.
    Returns (B, size_out) = sin(x) @ w.T + cos(x) @ z.T
    """
    B, size_in = x.shape
    size_out, k_w = w.shape
    assert k_w == size_in and z.shape == w.shape

    out_dtype = x.dtype
    x_it = jnp.dtype(x.dtype).itemsize
    w_it = jnp.dtype(w.dtype).itemsize
    o_it = jnp.dtype(out_dtype).itemsize

    # ---- batch (M) tiling: aligned, small padding, >=2 (>=4 when large) steps.
    align = 16 if x_it == 2 else 8
    tm_req = max(align, (int(tm) // align) * align)
    min_tiles = 1
    if B >= 2 * align:
        min_tiles = 2            # pipelining + v7x megacore sharding
    if B >= 512:
        min_tiles = 4
    tiles_m = max(_cdiv(B, tm_req), min_tiles)
    tm_eff = _round_up(_cdiv(B, tiles_m), align)
    tiles_m = _cdiv(B, tm_eff)
    Bp = tiles_m * tm_eff

    # ---- out-feature (N) tiling: resident weights when they fit, else tn | 128.
    budget = int(0.85 * _vmem_capacity_bytes())

    def footprint(tn_, n_tiles_):
        wbuf = 1 if n_tiles_ == 1 else 2           # single-buffer resident weights
        return (2 * tm_eff * size_in * x_it        # x tiles (double-buffered)
                + wbuf * 2 * tn_ * size_in * w_it  # w + z tiles
                + 2 * tm_eff * tn_ * o_it          # out tiles (double-buffered)
                + 2 * tm_eff * size_in * x_it      # sin/cos VMEM scratch
                + 2 * tm_eff * tn_ * 4             # f32 dot temporaries
                + (2 << 20))                       # headroom

    if footprint(size_out, 1) <= budget:
        tn, tiles_n = size_out, 1
    else:
        tn = max(128, (_round_up(size_out, 128) // 2 // 128) * 128)
        while tn > 128 and footprint(tn, 2) > budget:
            tn = max(128, (tn // 2 // 128) * 128)
        tiles_n = _cdiv(size_out, tn)
    # TODO(synk): add K (size_in) tiling for very large size_in.

    # ---- pad only when strictly needed (avoids the output slice copy otherwise).
    if Bp != B:
        x = jnp.pad(x, ((0, Bp - B), (0, 0)))
    Np = size_out
    if tiles_n > 1 and size_out % tn != 0:
        Np = tiles_n * tn
        w = jnp.pad(w, ((0, Np - size_out), (0, 0)))
        z = jnp.pad(z, ((0, Np - size_out), (0, 0)))

    def _weight_spec():
        if tiles_n == 1:
            try:  # resident slab, constant index_map -> no re-fetch, 1 buffer
                return pl.BlockSpec((tn, size_in), lambda i, j: (j, 0),
                                    pipeline_mode=pl.Buffered(1))
            except TypeError:
                pass
        return pl.BlockSpec((tn, size_in), lambda i, j: (j, 0))

    cost = pl.CostEstimate(
        flops=4 * Bp * size_in * Np,
        transcendentals=2 * Bp * size_in,
        bytes_accessed=(Bp * size_in * x_it + 2 * Np * size_in * w_it
                        + Bp * Np * o_it),
    )
    vmem_limit = int(min(max(footprint(tn, tiles_n), 16 << 20), budget))

    out = pl.pallas_call(
        _vonmises_kernel,
        out_shape=jax.ShapeDtypeStruct((Bp, Np), out_dtype),
        grid_spec=pltpu.PrefetchScalarGridSpec(
            num_scalar_prefetch=0,
            grid=(tiles_m, tiles_n),
            in_specs=[
                pl.BlockSpec((tm_eff, size_in), lambda i, j: (i, 0)),
                _weight_spec(),
                _weight_spec(),
            ],
            out_specs=pl.BlockSpec((tm_eff, tn), lambda i, j: (i, j)),
            scratch_shapes=[
                pltpu.VMEM((tm_eff, size_in), x.dtype),   # sin cache
                pltpu.VMEM((tm_eff, size_in), x.dtype),   # cos cache
            ],
        ),
        compiler_params=pltpu.CompilerParams(
            dimension_semantics=("parallel", "arbitrary"),
            vmem_limit_bytes=vmem_limit,
        ),
        cost_estimate=cost,
    )(x, w, z)

    if Bp != B or Np != size_out:
        out = out[:B, :size_out]
    return out


if __name__ == "__main__":
    # Small shapes consistent with the module: batch=16, size_in=32, size_out=64
    B, size_in, size_out = 16, 32, 64

    key = jax.random.PRNGKey(0)
    kx, kw, kz = jax.random.split(key, 3)

    x = jax.random.normal(kx, (B, size_in), dtype=jnp.float32)

    # Deterministic init mirroring nn.Linear default: U(-1/sqrt(in), 1/sqrt(in))
    bound = 1.0 / math.sqrt(size_in)
    w = jax.random.uniform(kw, (size_out, size_in), jnp.float32, -bound, bound)
    z = jax.random.uniform(kz, (size_out, size_in), jnp.float32, -bound, bound)

    out = vonmises_layer(x, w, z)
    out = jax.block_until_ready(out)

    # Pure-JAX reference check
    ref = jnp.sin(x) @ w.T + jnp.cos(x) @ z.T
    assert out.shape == (B, size_out)
    assert jnp.allclose(out, ref, atol=1e-5, rtol=1e-5), "mismatch vs reference"

    print("KERNEL_OK")
</pallas_src>

<mosaic_0001>
module attributes {stable_mosaic.version = 11 : i64} {
  func.func @_vonmises_kernel(%arg0: i32, %arg1: i32, %arg2: memref<8x32xf32, #tpu.memory_space<vmem>>, %arg3: memref<64x32xf32, #tpu.memory_space<vmem>>, %arg4: memref<64x32xf32, #tpu.memory_space<vmem>>, %arg5: memref<8x64xf32, #tpu.memory_space<vmem>>, %arg6: memref<8x32xf32, #tpu.memory_space<vmem>>, %arg7: memref<8x32xf32, #tpu.memory_space<vmem>>) attributes {dimension_semantics = [#tpu.dimension_semantics<parallel>, #tpu.dimension_semantics<arbitrary>], iteration_bounds = array<i64: 2, 1>, scalar_prefetch = 0 : i64, scratch_operands = 2 : i64, tpu.core_type = #tpu.core_type<tc>, window_params = [{transform_indices = @transform_0, window_bounds = array<i64: 8, 32>}, {pipeline_mode = #tpu.pipeline_mode<synchronous>, transform_indices = @transform_1, window_bounds = array<i64: 64, 32>}, {pipeline_mode = #tpu.pipeline_mode<synchronous>, transform_indices = @transform_2, window_bounds = array<i64: 64, 32>}, {transform_indices = @transform_3, window_bounds = array<i64: 8, 64>}]} {
    %c0_i32 = arith.constant 0 : i32
    %0 = arith.cmpi eq, %arg1, %c0_i32 : i32
    %1 = arith.extui %0 : i1 to i32
    %c0_i32_0 = arith.constant 0 : i32
    %2 = arith.cmpi ne, %1, %c0_i32_0 : i32
    scf.if %2 {
      %c0_11 = arith.constant 0 : index
      %c0_12 = arith.constant 0 : index
      %11 = vector.load %arg2[%c0_11, %c0_12] : memref<8x32xf32, #tpu.memory_space<vmem>>, vector<8x32xf32>
      %12 = math.sin %11 : vector<8x32xf32>
      %c0_13 = arith.constant 0 : index
      %c0_14 = arith.constant 0 : index
      %13 = vector.load %arg6[%c0_13, %c0_14] : memref<8x32xf32, #tpu.memory_space<vmem>>, vector<8x32xf32>
      tpu.vector_store %arg6[%c0_13, %c0_14], %12 {strides = array<i32>} : memref<8x32xf32, #tpu.memory_space<vmem>>, vector<8x32xf32>,
      %14 = math.cos %11 : vector<8x32xf32>
      %c0_15 = arith.constant 0 : index
      %c0_16 = arith.constant 0 : index
      %15 = vector.load %arg7[%c0_15, %c0_16] : memref<8x32xf32, #tpu.memory_space<vmem>>, vector<8x32xf32>
      tpu.vector_store %arg7[%c0_15, %c0_16], %14 {strides = array<i32>} : memref<8x32xf32, #tpu.memory_space<vmem>>, vector<8x32xf32>,
    } else {
    }
    %c0 = arith.constant 0 : index
    %c0_1 = arith.constant 0 : index
    %3 = vector.load %arg6[%c0, %c0_1] : memref<8x32xf32, #tpu.memory_space<vmem>>, vector<8x32xf32>
    %c0_2 = arith.constant 0 : index
    %c0_3 = arith.constant 0 : index
    %4 = vector.load %arg3[%c0_2, %c0_3] : memref<64x32xf32, #tpu.memory_space<vmem>>, vector<64x32xf32>
    %cst = arith.constant dense<0.000000e+00> : vector<8x64xf32>
    %5 = tpu.matmul %3, %4, %cst {dimension_numbers = #tpu.dot_dimension_numbers<[1], [1], [0], [0], [0, 0, 1, 0], [], []>} : vector<8x32xf32>, vector<64x32xf32>, vector<8x64xf32> -> vector<8x64xf32>
    %c0_4 = arith.constant 0 : index
    %c0_5 = arith.constant 0 : index
    %6 = vector.load %arg7[%c0_4, %c0_5] : memref<8x32xf32, #tpu.memory_space<vmem>>, vector<8x32xf32>
    %c0_6 = arith.constant 0 : index
    %c0_7 = arith.constant 0 : index
    %7 = vector.load %arg4[%c0_6, %c0_7] : memref<64x32xf32, #tpu.memory_space<vmem>>, vector<64x32xf32>
    %cst_8 = arith.constant dense<0.000000e+00> : vector<8x64xf32>
    %8 = tpu.matmul %6, %7, %cst_8 {dimension_numbers = #tpu.dot_dimension_numbers<[1], [1], [0], [0], [0, 0, 1, 0], [], []>} : vector<8x32xf32>, vector<64x32xf32>, vector<8x64xf32> -> vector<8x64xf32>
    %9 = arith.addf %5, %8 : vector<8x64xf32>
    %c0_9 = arith.constant 0 : index
    %c0_10 = arith.constant 0 : index
    %10 = vector.load %arg5[%c0_9, %c0_10] : memref<8x64xf32, #tpu.memory_space<vmem>>, vector<8x64xf32>
    tpu.vector_store %arg5[%c0_9, %c0_10], %9 {strides = array<i32>} : memref<8x64xf32, #tpu.memory_space<vmem>>, vector<8x64xf32>,
    return
  }
  func.func @transform_0(%arg0: i32, %arg1: i32) -> (i32, i32) {
    %c0_i32 = arith.constant 0 : i32
    %c0_i32_0 = arith.constant 0 : i32
    return %arg0, %c0_i32 : i32, i32
  }
  func.func @transform_1(%arg0: i32, %arg1: i32) -> (i32, i32) {
    %c0_i32 = arith.constant 0 : i32
    %c0_i32_0 = arith.constant 0 : i32
    return %arg1, %c0_i32 : i32, i32
  }
  func.func @transform_2(%arg0: i32, %arg1: i32) -> (i32, i32) {
    %c0_i32 = arith.constant 0 : i32
    %c0_i32_0 = arith.constant 0 : i32
    return %arg1, %c0_i32 : i32, i32
  }
  func.func @transform_3(%arg0: i32, %arg1: i32) -> (i32, i32) {
    %c0_i32 = arith.constant 0 : i32
    return %arg0, %arg1 : i32, i32
  }
}

</mosaic_0001>

<bundles_post_ra>
// kernel: vonmises_layer.1
= control target key start
LH: loop header
LB: loop body
LE: loop exit
PB: predicated region body
PF: predicated region fallthrough
CT: control target
= control target key end

     0   :  { %8 = vsyncpa [#allocation5], 0  ;;  %s1295_s0 = inlined_call_operand.vmem [shape: f32[16,32], index: 0, kind: input, shape index: {}]   ;;  %s1296_s1 = inlined_call_operand.vmem [shape: f32[64,32], index: 1, kind: input, shape index: {}]   ;;  %s1297_s2 = inlined_call_operand.vmem [shape: f32[64,32], index: 2, kind: input, shape index: {}]   ;;  %s1298_s3 = inlined_call_operand.hbm [shape: f32[16,64], index: 3, kind: output, shape index: {}]  }
   0x1   :  { %10 = vsyncpa [#allocation5 + $0x1], 0  ;;  %s1077_s12 = smov 0   ;;  %s1079_s13 = smov 0  }
   0x2   :  { %s1081_s14 = smov 0   ;;  %s1083_s15 = smov 0  }
   0x3   :  { %s1085_s16 = smov 0   ;;  %s1087_s17 = smov 0  }
   0x4 LB: > { %s767_s18 = sadd.s32 4294967295, %s1045_s17   ;;  %s768_s19 = sadd.s32 4294967294, %s1045_s17   ;;  %s1045_s17 = sphi %s1087_s17, %s16_s17   ;;  %s1041_s16 = sphi %s1085_s16, %s1307_s16   ;;  %s1037_s15 = sphi %s1083_s15, %s1306_s15   ;;  %s1033_s14 = sphi %s1081_s14, %s1305_s14   ;;  %s1029_s13 = sphi %s1079_s13, %s1304_s13   ;;  %s1025_s12 = sphi %s1077_s12, %s1303_s12  }
   0x5   : > { %s28_s20 = sadd.s32 1, %s1041_s16  ;;  %s115_s21 = sadd.s32 1, %s1033_s14 }
   0x6   : > { %p30_p0 = scmp.ge.s32.totalorder %s28_s20, 2  ;;  %p125_p1 = scmp.ne.s32.totalorder %s1033_s14, %s1029_s13 }
   0x7   : > { %p126_p2 = scmp.eq.s32.totalorder %s767_s18, 1  ;;  %p131_p3 = scmp.ne.s32.totalorder %s1029_s13, %s1025_s12 }
   0x8   : > { %s1309_s20 = smov (%p30_p0, %s28_s20), 0  ;;  %p132_p5 = scmp.eq.s32.totalorder %s768_s19, 1 }
   0x9   : > { %p1117_p4 = por %p126_p2, %p125_p1  ;;  %s110_s23 = ssub.s32 %s1041_s16, %s1309_s20 }
   0xa   : > { %p773_p6 = scmp.ge.s32.totalorder %s1045_s17, 1  ;;  %p113_p7 = scmp.eq.s32.totalorder %s110_s23, 0 }
   0xb   : > { %p1124_p8 = por %p132_p5, %p131_p3  ;;  %p175_p9 = scmp.lt.s32.totalorder %s1045_s17, 3 }
   0xc   : > { %s1130_s25 = scalar_select %p113_p7, %s1033_s14, %s115_s21  }
   0xd   : > { %p176_p10 = pnand %p773_p6, %p175_p9 }
   0xe   : > { %p208_p11 = scmp.lt.s32.totalorder (!%p176_p10), %s1037_s15, 1  ;;  %v1047_v0 = vmov (!%p176_p10), 0.0|0.0   ;;  %vm333_vm0 = vcmask (!%p176_p10), 261120   ;;  %v449_v1 = vld [vmem:[%s1297_s2] sm:$0xff] (!%p176_p10)  ;;  %v450_v2 = vld [vmem:[%s1297_s2 + $0x8] sm:$0xff] (!%p176_p10)  ;;  %vm1048_vm2 = vmmov (!%p176_p10), 0  }
   0xf   : > { %179 = sbr.rel (%p176_p10) target bundleno = 343 (0x157), region = 32  ;;  %862 = vmatprep.subr.bf16.mxu1 (!%p176_p10), %v1047_v0  ;;  %878 = vmatprep.subr.bf16.mxu0 (!%p176_p10), %v1047_v0  ;;  %v863_v3 = vpack.c.bf16 (!%p176_p10), %v450_v2, %v449_v1  ;;  %vm1144_vm1 = vmpackc.low (!%p176_p10), %vm333_vm0, %vm333_vm0  ;;  %v440_v5 = vld [vmem:[%s1296_s1] sm:$0xff] (!%p176_p10)  ;;  %v441_v6 = vld [vmem:[%s1296_s1 + $0x8] sm:$0xff] (!%p176_p10)  ;;  %v1049_v8 = vmov (!%p176_p10), 0.0   ;;  %v1050_v35 = vmov (!%p176_p10), 683565275  }
  0x10   : > { %v879_v7 = vpack.c.bf16 (!%p176_p10), %v441_v6, %v440_v5  ;;  %840 = vmatprep.mubr.msk.f32.mxu1 (!%p176_p10), %vm1048_vm2, %v1049_v8  ;;  %859 = vmatprep.mubr.msk.f32.mxu0 (!%p176_p10), %vm1048_vm2, %v1049_v8  ;;  %v451_v10 = vld [vmem:[%s1297_s2 + $0x10] sm:$0xff] (!%p176_p10)  ;;  %v452_v11 = vld [vmem:[%s1297_s2 + $0x18] sm:$0xff] (!%p176_p10)  ;;  %v453_v22 = vld [vmem:[%s1297_s2 + $0x20] sm:$0xff] (!%p176_p10)  ;;  %v1051_v37 = vmov (!%p176_p10), 2475754826   ;;  %s205_s29 = sand.u32 (!%p176_p10), 1, %s1029_s13  }
  0x11   : > { %865 = vmatpush3.bf16.xpose.msk.msra.mxu1 (!%p176_p10), %vm1144_vm1, %v863_v3  ;;  %v442_v13 = vld [vmem:[%s1296_s1 + $0x10] sm:$0xff] (!%p176_p10)  ;;  %v443_v14 = vld [vmem:[%s1296_s1 + $0x18] sm:$0xff] (!%p176_p10)  ;;  %v867_v16 = vpack.c.bf16 (!%p176_p10), %v452_v11, %v451_v10  ;;  %v454_v23 = vld [vmem:[%s1297_s2 + $0x28] sm:$0xff] (!%p176_p10)  ;;  %v1052_v39 = vmov (!%p176_p10), 2131351028   ;;  %s774_s30 = sshll.u32 (!%p176_p10), %s205_s29, 3 }
  0x12   : > { %881 = vmatpush3.bf16.xpose.msk.msra.mxu0 (!%p176_p10), %vm1144_vm1, %v879_v7  ;;  %866 = vmatprep.subr.bf16.mxu1 (!%p176_p10), %v1047_v0  ;;  %v883_v18 = vpack.c.bf16 (!%p176_p10), %v443_v14, %v442_v13  ;;  %v444_v24 = vld [vmem:[%s1296_s1 + $0x20] sm:$0xff] (!%p176_p10)  ;;  %v445_v25 = vld [vmem:[%s1296_s1 + $0x28] sm:$0xff] (!%p176_p10)  ;;  %v871_v28 = vpack.c.bf16 (!%p176_p10), %v454_v23, %v453_v22  ;;  %v455_v29 = vld [vmem:[%s1297_s2 + $0x30] sm:$0xff] (!%p176_p10)  ;;  %v1053_v41 = vmov (!%p176_p10), 2102212464   ;;  %s803_s4 = sshll.u32 (!%p176_p10), %s1037_s15, 7 }
  0x13   : > { %882 = vmatprep.subr.bf16.mxu0 (!%p176_p10), %v1047_v0  ;;  %v456_v30 = vld [vmem:[%s1297_s2 + $0x38] sm:$0xff] (!%p176_p10)  ;;  %v887_v33 = vpack.c.bf16 (!%p176_p10), %v445_v25, %v444_v24  ;;  %v1054_v43 = vmov (!%p176_p10), 920167782   ;;  %v1055_v51 = vmov (!%p176_p10), 1326507024   ;;  %v446_v57 = vld [vmem:[%s1296_s1 + $0x30] sm:$0xff] (!%p176_p10)  ;;  %s1248_s9 = scalar_lea.hbm (!%p176_p10), %s1298_s3, %s803_s4 }
  0x14   : > { %v875_v45 = vpack.c.bf16 (!%p176_p10), %v456_v30, %v455_v29  ;;  %v447_v58 = vld [vmem:[%s1296_s1 + $0x38] sm:$0xff] (!%p176_p10)  ;;  %s207_s5 = scalar_lea.vmem (!%p176_p10), [#allocation4], %s774_s30 }
  0x15   : > { %v891_v5 = vpack.c.bf16 (!%p176_p10), %v447_v58, %v446_v57  ;;  %s669_s6 = sshll.u32 (!%p176_p10), %s207_s5, 4  ;;  %s1250_s6 = int_to_ptr.vmem [resolvable:$true] %s669_s6 }
  0x16   : > { %s209_s26 = scalar_select %p208_p11, %s1037_s15, 1 }
  0x17   : > { %s655_s15 = scalar_lea.sflag [#allocation5], %s205_s29  ;;  %s967_s10 = scalar_lea.vmem %s1250_s6, 128 }
  0x18   : > { %s775_s8 = sshll.u32 %s209_s26, 3  ;;  %p968_p12 = scmp.ne.s32.totalorder %s1250_s6, %s967_s10 }
  0x19   : > { %s211_s11 = scalar_lea.vmem %s1295_s0, %s775_s8  ;;  %869 = vmatpush3.bf16.xpose.msk.msra.mxu1 %vm1144_vm1, %v867_v16 }
  0x1a   : > { %v1159_v9 = vld [vmem:[%s211_s11] sm:$0xff]  ;;  %885 = vmatpush3.bf16.xpose.msk.msra.mxu0 %vm1144_vm1, %v883_v18  ;;  %870 = vmatprep.subr.bf16.mxu1 %v1047_v0  ;;  %p969_p13 = pnand %p968_p12, %p1117_p4  ;;  %s1056_s11 = smov [#allocation4]  }
  0x1b   : > { %v232_v12 = vand.u32 2139095040, %v1159_v9  ;;  %v229_v17 = vand.u32 2147483647, %v1159_v9  ;;  %886 = vmatprep.subr.bf16.mxu0 %v1047_v0  ;;  %vm231_vm10 = vcmp.lt.s32.totalorder %v1159_v9, 0  ;;  %s971_s18 = sshll.u32 %s1056_s11, 4  ;;  %s972_s18 = int_to_ptr.vmem [resolvable:$false] %s971_s18 }
  0x1c   : > { %p970_p0 = pneg %p969_p13  ;;  %s973_s19 = scalar_lea.vmem %s972_s18, 256 }
  0x1d   : > { %v233_v15 = vshrl.u32 %v232_v12, 23  ;;  %v236_v21 = vand.u32 8388607, %v229_v17  ;;  %vm230_vm11 = vcmp.le.f32.partialorder %v229_v17, 0.7853982  ;;  %p974_p1 = scmp.lt.s32.totalorder %s1250_s6, %s972_s18  ;;  %p975_p2 = scmp.lt.s32.totalorder %s973_s19, %s967_s10 }
  0x1f   : > { %v776_v19 = vadd.s32 4294967169, %v233_v15  ;;  %v237_v31 = vor.u32 8388608, %v236_v21  ;;  %p976_p3 = por %p975_p2, %p974_p1 }
  0x21   : > { %v239_v20 = vadd.s32 1, %v776_v19  ;;  %873 = vmatpush3.bf16.xpose.msk.msra.mxu1 %vm1144_vm1, %v871_v28  ;;  %v277_v53 = vshll.u32 %v237_v31, 8  ;;  %p977_p5 = pnand %p976_p3, %p970_p0 }
  0x22   : > { %889 = vmatpush3.bf16.xpose.msk.msra.mxu0 %vm1144_vm1, %v887_v33  ;;  %874 = vmatprep.subr.bf16.mxu1 %v1047_v0 }
  0x23   : > { %vm240_vm3 = vcmp.gt.s32.totalorder %v239_v20, 0  ;;  %890 = vmatprep.subr.bf16.mxu0 %v1047_v0 }
  0x24   : > { %v241_v26 = vsel %vm240_vm3, %v239_v20, 0  ;;  %vm321_vm3 = vweird.f32 %v1159_v9 }
  0x25   : > { %v243_v27 = vand.u32 31, %v241_v26  ;;  %v242_v32 = vshrl.u32 %v241_v26, 5 }
  0x27   : > { %v244_v34 = vsub.s32 32, %v243_v27  ;;  %v246_v36 = vshll.u32 %v1050_v35, %v243_v27  ;;  %v249_v38 = vshll.u32 %v1051_v37, %v243_v27  ;;  %v252_v40 = vshll.u32 %v1052_v39, %v243_v27 }
  0x28   : > { %v255_v42 = vshll.u32 %v1053_v41, %v243_v27  ;;  %v258_v44 = vshll.u32 %v1054_v43, %v243_v27  ;;  %vm261_vm4 = vcmp.lt.s32.totalorder %v242_v32, 1  ;;  %vm264_vm5 = vcmp.lt.s32.totalorder %v242_v32, 4 }
  0x29   : > { %v245_v46 = vshrl.u32 %v1050_v35, %v244_v34  ;;  %v247_v47 = vshrl.u32 %v1051_v37, %v244_v34  ;;  %v250_v48 = vshrl.u32 %v1052_v39, %v244_v34  ;;  %v253_v49 = vshrl.u32 %v1053_v41, %v244_v34  ;;  %877 = vmatpush3.bf16.xpose.msk.msra.mxu1 %vm1144_vm1, %v875_v45 }
  0x2a   : > { %v256_v50 = vshrl.u32 %v1054_v43, %v244_v34  ;;  %v259_v52 = vshrl.u32 %v1055_v51, %v244_v34  ;;  %vm262_vm6 = vcmp.lt.s32.totalorder %v242_v32, 2  ;;  %vm263_vm7 = vcmp.lt.s32.totalorder %v242_v32, 3  ;;  %893 = vmatpush3.bf16.xpose.msk.msra.mxu0 %vm1144_vm1, %v891_v5 }
  0x2b   : > { %v248_v54 = vor.u32 %v247_v47, %v246_v36  ;;  %v251_v55 = vor.u32 %v250_v48, %v249_v38  ;;  %v254_v56 = vor.u32 %v253_v49, %v252_v40 }
  0x2c   : > { %v257_v59 = vor.u32 %v256_v50, %v255_v42  ;;  %v260_v60 = vor.u32 %v259_v52, %v258_v44 }
  0x2d   : > { %v265_v61 = vsel %vm261_vm4, %v245_v46, %v248_v54  ;;  %v266_v62 = vsel %vm264_vm5, %v254_v56, 2102212464  ;;  %v269_v63 = vsel %vm261_vm4, %v248_v54, %v251_v55  ;;  %v273_v1 = vsel %vm261_vm4, %v251_v55, %v254_v56 }
  0x2e   : > { %v267_v0 = vsel %vm263_vm7, %v251_v55, %v266_v62  ;;  %v270_v2 = vsel %vm264_vm5, %v257_v59, 920167782  ;;  %v274_v3 = vsel %vm264_vm5, %v260_v60, 1326507024  ;;  %vm652_vm4 = vcmask 523264  }
  0x2f   : > { %v271_v6 = vsel %vm263_vm7, %v254_v56, %v270_v2  ;;  %v275_v7 = vsel %vm263_vm7, %v257_v59, %v274_v3  ;;  %v268_v8 = vsel %vm262_vm6, %v265_v61, %v267_v0 }
  0x30   : > { %v272_v10 = vsel %vm262_vm6, %v269_v63, %v271_v6  ;;  %v276_v11 = vsel %vm262_vm6, %v273_v1, %v275_v7  ;;  %v284_v16 = vmul.u32 %v277_v53, %v268_v8 }
  0x31   : > { %v1220_v12 = vmul.u32.u64.low %v277_v53, %v276_v11  ;;  %v1221_v13 = vmul.u32.u64.high %v277_v53, %v276_v11, %v1220_v12  ;;  %v1223_v14 = vmul.u32.u64.low %v277_v53, %v272_v10  ;;  %v1224_v15 = vmul.u32.u64.high %v277_v53, %v272_v10, %v1223_v14 }
  0x33   : > { %vm286_vm8 = vc.u32 %v1221_v13, %v1223_v14  ;;  %v287_v18 = vadd.s32 1, %v1224_v15  ;;  %v285_v29 = vadd.s32 %v1223_v14, %v1221_v13 }
  0x35   : > { %v288_v19 = vsel %vm286_vm8, %v287_v18, %v1224_v15 }
  0x36   : > { %v289_v20 = vadd.s32 %v288_v19, %v284_v16 }
  0x38   : > { %v290_v21 = vadd.s32 536870912, %v289_v20 }
  0x3a   : > { %v291_v22 = vshrl.u32 %v290_v21, 30 }
  0x3c   : > { %v292_v23 = vshll.u32 %v291_v22, 30  ;;  %v315_v40 = vsub.s32 4, %v291_v22 }
  0x3e   : > { %v293_v24 = vsub.s32 %v289_v20, %v292_v23  ;;  %v316_v43 = vsel %vm231_vm10, %v315_v40, %v291_v22 }
  0x3f   : > { %v318_v46 = vsel %vm230_vm11, 0, %v316_v43 }
  0x40   : > { %v295_v25 = vsub.s32 0, %v293_v24  ;;  %v322_v47 = vadd.s32 3, %v318_v46  ;;  %v428_v49 = vand.u32 3, %v318_v46 }
  0x42   : > { %v777_v26 = vmin.u32 %v295_v25, %v293_v24  ;;  %v323_v48 = vand.u32 3, %v322_v47  ;;  %vm433_vm13 = vcmp.eq.s32.totalorder %v428_v49, 2  ;;  %vm430_vm15 = vcmp.eq.s32.totalorder %v428_v49, 0 }
  0x43   : > { %vm429_vm2 = vcmp.lt.s32.totalorder %v428_v49, 2 }
  0x44   : > { %v297_v27 = vclz %v777_v26  ;;  %vm328_vm12 = vcmp.eq.s32.totalorder %v323_v48, 2  ;;  %vm325_vm14 = vcmp.eq.s32.totalorder %v323_v48, 0  ;;  %vm324_vm1 = vcmp.lt.s32.totalorder %v323_v48, 2 }
  0x46   : > { %v778_v28 = vadd.s32 4294967294, %v297_v27 }
  0x48   : > { %vm779_vm9 = vcmp.lt.s32.totalorder %v778_v28, 0 }
  0x49   : > { %v300_v4 = vsel %vm779_vm9, 0, %v778_v28 }
  0x4a   : > { %v301_v30 = vsub.s32 32, %v300_v4  ;;  %v302_v31 = vshll.u32 %v293_v24, %v300_v4  ;;  %v305_v32 = vsub.s32 4294967266, %v300_v4 }
  0x4c   : > { %v303_v33 = vshrl.u32 %v285_v29, %v301_v30  ;;  %v306_v34 = vadd.s32 127, %v305_v32 }
  0x4e   : > { %v304_v35 = vor.u32 %v303_v33, %v302_v31  ;;  %v307_v36 = vshll.u32 %v306_v34, 23 }
  0x50   : > { %v308_v37 = vor.u32 4788187, %v307_v36  ;;  %v311_v38 = vcvt.s32.f32 %v304_v35 }
  0x52   : > { %v309_v39 = vand.u32 2147483647, %v308_v37 }
  0x54   : > { %v312_v41 = vmul.f32 %v311_v38, %v309_v39 }
  0x56   : > { %v313_v42 = vxor.u32 2147483648, %v312_v41 }
  0x58   : > { %v314_v44 = vsel %vm231_vm10, %v313_v42, %v312_v41 }
  0x59   : > { %v317_v45 = vsel %vm230_vm11, %v1159_v9, %v314_v44 }
  0x5a   : > { %963 = vcosq.f32 %v317_v45 }
  0x5b   : > { %965 = vsinq.f32 %v317_v45 }
  0x64   : > { %v964_v50 = vpop.eup %963 }
  0x65   : > { %v966_v51 = vpop.eup %965  ;;  %v329_v52 = vxor.u32 2147483648, %v964_v50 }
  0x66   : > { %v326_v17 = vxor.u32 2147483648, %v966_v51 }
  0x67   : > { %v330_v53 = vsel %vm328_vm12, %v329_v52, %v966_v51  ;;  %v435_v54 = vsel %vm433_vm13, %v329_v52, %v966_v51 }
  0x68   : > { %v327_v55 = vsel %vm325_vm14, %v964_v50, %v326_v17  ;;  %v432_v56 = vsel %vm430_vm15, %v964_v50, %v326_v17 }
  0x69   : > { %v331_v57 = vsel %vm324_vm1, %v327_v55, %v330_v53  ;;  %v436_v58 = vsel %vm429_vm2, %v432_v56, %v435_v54 }
  0x6a   : > { %v332_v59 = vsel %vm321_vm3, nan, %v331_v57  ;;  %v437_v60 = vsel %vm321_vm3, nan, %v436_v58 }
  0x6b   : > { %334 = vst.msk [vmem:[#allocation2] sm:$0xff] %vm333_vm0, %v332_v59  ;;  %438 = vst.msk [vmem:[#allocation3] sm:$0xff] %vm333_vm0, %v437_v60 }
  0x72   : > { %v448_v61 = vld [vmem:[#allocation3] sm:$0xff]  ;;  %v439_v62 = vld [vmem:[#allocation2] sm:$0xff] }
  0x73   : > { %841 = vmatmul.mubr.msk.f32.vlgmr.msra.gmra.mrb[0].mxu1 %vm333_vm0, %v448_v61  ;;  %860 = vmatmul.mubr.msk.f32.vlgmr.msra.gmra.mrb[0].mxu0 %vm333_vm0, %v439_v62 }
 0x146   : > { %v551_v9 = vpop.f32.mrb[0].mxu1  ;;  %v648_v63 = vpop.f32.mrb[0].mxu0 }
 0x147   : > { %v649_v1 = vadd.f32 %v648_v63, %v551_v9  ;;  %v842_v0 = vpop.f32.mrb[1].mxu1  ;;  %v861_v2 = vpop.f32.mrb[1].mxu0 }
 0x149   : > { %653 = vst.msk [vmem:[%s207_s5] sm:$0xff] %vm652_vm4, %v649_v1 }
 0x14a   : > { %980 = shalt.err (!%p977_p5)
}
 0x14b   : > { %s981_s21 = scalar_lea.hbm %s1248_s9, 128  ;;  %s985_s27 = scalar_lea.hbm %s1298_s3, 256 }
 0x14c   : > { %p982_p6 = scmp.ne.s32.totalorder %s1248_s9, %s981_s21  ;;  %p986_p10 = scmp.lt.u32.totalorder %s1248_s9, %s1298_s3 }
 0x14d   : > { %p987_p11 = scmp.lt.u32.totalorder %s985_s27, %s981_s21  ;;  %p989_p13 = scmp.lt.u32.totalorder %s981_s21, %s1248_s9 }
 0x14e   : > { %p983_p7 = pnand %p982_p6, %p1117_p4 }
 0x14f   : > { %p988_p12 = por %p987_p11, %p986_p10 }
 0x150   : > { %p984_p9 = pneg %p983_p7 }
 0x151   : > { %p990_p0 = por %p989_p13, %p988_p12 }
 0x153   : > { %p991_p1 = pnand %p990_p0, %p984_p9 }
 0x155   : > { %994 = shalt.err (!%p991_p1)
}
 0x156   : > { %899 = dma.vmem_to_hbm [thread:$0]  (%p1117_p4), %s1250_s6, 128, %s1248_s9, %s655_s15  }
 0x157 PF: > { %p905_p2 = scmp.ge.s32.totalorder %s1045_s17, 2  ;;  %s681_s30 = sand.u32 1, %s1025_s12  }
 0x158   : > { %s682_s4 = scalar_lea.sflag [#allocation5], %s681_s30 }
 0x159   : > { %p902_p3 = pnand %p905_p2, %p1124_p8 }
 0x15b   : > { %1020 = dma.done.wait (!%p902_p3), %s682_s4, 128  }
 0x15c   : > { %1022 = vsyncadd (!%p902_p3), %s682_s4, 4294967168  ;;  %s16_s17 = sadd.s32 1, %s1045_s17   ;;  %s1303_s12 = smov %s1029_s13 }
 0x15d   : > { %p13_p5 = scmp.ge.s32.totalorder %s16_s17, 4   ;;  %s1304_s13 = smov %s1033_s14 }
 0x15e   : > { %s1305_s14 = smov %s1130_s25  ;;  %s1306_s15 = smov %s1041_s16 }
 0x15f   : > { %s1307_s16 = smov %s1309_s20  ;;  %15 = sbr.rel (!%p13_p5) target bundleno = 4 (0x4), region = 77 }
 0x166   :  { %687 = vsyncpa [#allocation5], 1 }
 0x167   :  { %689 = vsyncpa [#allocation5 + $0x1], 1 }

</bundles_post_ra>
